<compile_context>
chip_gen: v7x
topology: tpu7x:2x2x1
jax: 0.10.0
libtpu: 0.0.40
codegen_flags: <defaults>
</compile_context>

<pallas_src>
import functools

import jax
import jax.numpy as jnp
from jax.experimental import pallas as pl
from jax.experimental.pallas import tpu as pltpu


def _round_up(x: int, m: int) -> int:
    return ((x + m - 1) // m) * m


def _round_down(x: int, m: int) -> int:
    return (x // m) * m


def _tpu_vmem_bytes() -> int:
    """Physical per-core VMEM; conservative (v7x, 64 MiB) default if unqueryable."""
    try:
        info = pltpu.get_tpu_info()
        v = int(getattr(info, "vmem_capacity_bytes", 0))
        if v > 0:
            return v
    except Exception:
        pass
    return 64 * 1024 * 1024


def _sample_softmax_kernel(x_ref, o_ref, *, smooth: float, n_valid: int):
    """Row-wise softmax (+ optional fused smoothing) on a (TB, N) block."""
    x = x_ref[...].astype(jnp.float32)
    m = jnp.max(x, axis=-1, keepdims=True)
    e = jnp.exp(x - m)
    s = jnp.sum(e, axis=-1, keepdims=True)
    # Exact per-row reciprocal: approx=True (~1e-3 rel. err) breached the
    # accuracy check; one f32 divide per row is negligible at mem-bound.
    inv = 1.0 / s
    if 0.0 < smooth < 1.0:
        # Fused smoothing: o = e * ((1-smooth)/s) + smooth/N
        scale = (1.0 - smooth) * inv
        o_ref[...] = (e * scale + (smooth / float(n_valid))).astype(o_ref.dtype)
    else:
        o_ref[...] = (e * inv).astype(o_ref.dtype)


def _softmax_flat_xla(x2d, smooth: float):
    """XLA fallback for lane-sparse or VMEM-overflowing rows."""
    p = jax.nn.softmax(x2d.astype(jnp.float32), axis=-1)
    if 0.0 < smooth < 1.0:
        p = p * (1.0 - smooth) + smooth / x2d.shape[1]
    return p.astype(x2d.dtype)


def sample_softmax(x, *, squeeze_channels: bool = False, smooth: float = 0.0):
    """Pallas implementation of SampleSoftmaxLayer.forward."""
    input_shape = x.shape
    b = input_shape[0]
    n_flat = 1
    for d in input_shape[1:]:
        n_flat *= d

    x2d = x.reshape(b, n_flat)
    dtype_size = jnp.dtype(x.dtype).itemsize
    sublane = {4: 8, 2: 16, 1: 32}.get(dtype_size, 8)

    # Per-row VMEM bytes: 2x double-buffered input + 2x double-buffered output
    # blocks plus ~3 f32 block-sized temporaries materialized in the kernel
    # (x.astype(f32), e, scaled result).
    bytes_per_row = n_flat * (2 * dtype_size + 2 * dtype_size + 3 * 4)

    vmem_phys = _tpu_vmem_bytes()
    vmem_budget = int(vmem_phys * 0.45)  # headroom for compiler scratch

    if n_flat < 128 or sublane * bytes_per_row > vmem_budget:
        # Lane-sparse rows (masked partial stores + fixed pallas_call overhead
        # dominate) or rows too large for even a sublane-height block.
        # TODO(synk): in-block online softmax (chunked fori_loop over N with a
        # running max/sum carry) would keep huge-N rows inside Pallas.
        out2d = _softmax_flat_xla(x2d, smooth)
    else:
        big_vmem = vmem_phys >= (96 << 20)   # v5e / v6e: 128 MiB per TC
        two_tc = vmem_phys <= (64 << 20)     # proxy for v7x (2 TensorCores/chip)

        # Row-block size: as large as the VMEM budget allows, with a
        # generation-aware cap (bigger tiles on 128 MiB chips).
        tb_cap = 1024 if big_vmem else 256
        tb = min(tb_cap,
                 max(sublane, _round_down(vmem_budget // bytes_per_row, sublane)))

        # On 2-TC chips keep >= 4 grid steps (>= 2 per core) when the batch
        # allows, so each core gets pipelined load/compute/store overlap.
        # On single-TC chips splitting only adds per-step overhead.
        if two_tc and b >= 4 * sublane:
            tb = min(tb, _round_up(pl.cdiv(b, 4), sublane))

        if tb >= b:
            tb = b  # one block; block dims == array dims -> always layout-legal
        else:
            tb = max(sublane, _round_down(tb, sublane))  # ragged edge handled below

        grid = (pl.cdiv(b, tb),)

        kernel = functools.partial(_sample_softmax_kernel,
                                   smooth=float(smooth), n_valid=n_flat)

        cost = pl.CostEstimate(
            flops=5 * b * n_flat,
            transcendentals=b * n_flat,
            bytes_accessed=2 * b * n_flat * dtype_size,
        )

        # Scoped VMEM limit: enough for double-buffered blocks + temps, capped
        # well under physical VMEM for the detected generation.
        vmem_limit = int(min(max(32 << 20, 2 * tb * bytes_per_row),
                             int(0.75 * vmem_phys)))
        vmem_limit = max(vmem_limit, 16 << 20)

        out2d = pl.pallas_call(
            kernel,
            out_shape=jax.ShapeDtypeStruct((b, n_flat), x.dtype),
            grid_spec=pltpu.PrefetchScalarGridSpec(
                num_scalar_prefetch=0,
                grid=grid,
                in_specs=[pl.BlockSpec((tb, n_flat), lambda i: (i, 0))],
                out_specs=pl.BlockSpec((tb, n_flat), lambda i: (i, 0)),
            ),
            compiler_params=pltpu.CompilerParams(
                dimension_semantics=("parallel",),
                vmem_limit_bytes=vmem_limit,
            ),
            cost_estimate=cost,
        )(x2d)

    out = out2d.reshape(input_shape)
    if squeeze_channels and input_shape[-1] == 1:
        # torch.squeeze(x, -1): only drops the dim if it has size 1.
        out = out.reshape(input_shape[:-1])
    return out


def _reference(x, *, squeeze_channels=False, smooth=0.0):
    """Pure-JAX reference for correctness checking."""
    shape = x.shape
    b = shape[0]
    x2 = x.reshape(b, -1).astype(jnp.float32)
    p = jax.nn.softmax(x2, axis=-1)
    if 0.0 < smooth < 1.0:
        p = p * (1.0 - smooth) + smooth / x2.shape[1]
    p = p.astype(x.dtype).reshape(shape)
    if squeeze_channels and shape[-1] == 1:
        p = p.reshape(shape[:-1])
    return p


if __name__ == "__main__":
    key = jax.random.PRNGKey(0)
    # Small NCHW input consistent with the module: batch=2, channels=4, 16x16.
    x = jax.random.normal(key, (2, 4, 16, 16), dtype=jnp.float32)

    # Module defaults: squeeze_channels=False, smooth=0
    out = sample_softmax(x, squeeze_channels=False, smooth=0.0)
    jax.block_until_ready(out)
    ref = _reference(x, squeeze_channels=False, smooth=0.0)
    assert out.shape == x.shape
    assert jnp.allclose(out, ref, atol=1e-5, rtol=1e-4)

    # Smoothing branch (0 < smooth < 1).
    out_s = sample_softmax(x, squeeze_channels=False, smooth=0.1)
    jax.block_until_ready(out_s)
    ref_s = _reference(x, squeeze_channels=False, smooth=0.1)
    assert jnp.allclose(out_s, ref_s, atol=1e-5, rtol=1e-4)

    # squeeze_channels with a size-1 trailing dim, n_flat=128 (Pallas path).
    key2 = jax.random.PRNGKey(1)
    y = jax.random.normal(key2, (2, 4, 32, 1), dtype=jnp.float32)
    out_q = sample_softmax(y, squeeze_channels=True, smooth=0.0)
    jax.block_until_ready(out_q)
    ref_q = _reference(y, squeeze_channels=True, smooth=0.0)
    assert out_q.shape == (2, 4, 32)
    assert jnp.allclose(out_q, ref_q, atol=1e-5, rtol=1e-4)

    # Tiny flattened dim (n_flat=16 < 128) exercises the XLA fallback path.
    key3 = jax.random.PRNGKey(2)
    z = jax.random.normal(key3, (2, 4, 4, 1), dtype=jnp.float32)
    out_z = sample_softmax(z, squeeze_channels=True, smooth=0.2)
    jax.block_until_ready(out_z)
    ref_z = _reference(z, squeeze_channels=True, smooth=0.2)
    assert out_z.shape == (2, 4, 4)
    assert jnp.allclose(out_z, ref_z, atol=1e-5, rtol=1e-4)

    print("KERNEL_OK")
</pallas_src>

<mosaic_0001>
module attributes {stable_mosaic.version = 11 : i64} {
  func.func @_sample_softmax_kernel(%arg0: i32, %arg1: memref<2x1024xf32, #tpu.memory_space<vmem>>, %arg2: memref<2x1024xf32, #tpu.memory_space<vmem>>) attributes {dimension_semantics = [#tpu.dimension_semantics<parallel>], iteration_bounds = array<i64: 1>, scalar_prefetch = 0 : i64, scratch_operands = 0 : i64, tpu.core_type = #tpu.core_type<tc>, window_params = [{transform_indices = @transform_0, window_bounds = array<i64: 2, 1024>}, {transform_indices = @transform_1, window_bounds = array<i64: 2, 1024>}]} {
    %c0 = arith.constant 0 : index
    %c0_0 = arith.constant 0 : index
    %0 = vector.load %arg1[%c0, %c0_0] : memref<2x1024xf32, #tpu.memory_space<vmem>>, vector<2x1024xf32>
    %cst = arith.constant dense<0xFF800000> : vector<2xf32>
    %1 = vector.multi_reduction <maximumf>, %0, %cst [1] : vector<2x1024xf32> to vector<2xf32>
    %2 = vector.shape_cast %1 : vector<2xf32> to vector<2x1xf32>
    %3 = vector.broadcast %2 : vector<2x1xf32> to vector<2x1024xf32>
    %4 = arith.subf %0, %3 : vector<2x1024xf32>
    %5 = math.exp %4 : vector<2x1024xf32>
    %cst_1 = arith.constant dense<0.000000e+00> : vector<2xf32>
    %6 = vector.multi_reduction <add>, %5, %cst_1 [1] : vector<2x1024xf32> to vector<2xf32>
    %7 = vector.shape_cast %6 : vector<2xf32> to vector<2x1xf32>
    %cst_2 = arith.constant 1.000000e+00 : f32
    %8 = vector.broadcast %cst_2 : f32 to vector<2x1xf32>
    %9 = arith.divf %8, %7 : vector<2x1xf32>
    %10 = vector.broadcast %9 : vector<2x1xf32> to vector<2x1024xf32>
    %11 = arith.mulf %5, %10 : vector<2x1024xf32>
    %c0_3 = arith.constant 0 : index
    %c0_4 = arith.constant 0 : index
    %12 = vector.load %arg2[%c0_3, %c0_4] : memref<2x1024xf32, #tpu.memory_space<vmem>>, vector<2x1024xf32>
    tpu.vector_store %arg2[%c0_3, %c0_4], %11 {strides = array<i32>} : memref<2x1024xf32, #tpu.memory_space<vmem>>, vector<2x1024xf32>,
    return
  }
  func.func @transform_0(%arg0: i32) -> (i32, i32) {
    %c0_i32 = arith.constant 0 : i32
    %c0_i32_0 = arith.constant 0 : i32
    return %arg0, %c0_i32 : i32, i32
  }
  func.func @transform_1(%arg0: i32) -> (i32, i32) {
    %c0_i32 = arith.constant 0 : i32
    %c0_i32_0 = arith.constant 0 : i32
    return %arg0, %c0_i32 : i32, i32
  }
}

</mosaic_0001>

<bundles_post_ra>
// kernel: tpu_custom_call.1
= control target key start
LH: loop header
LB: loop body
LE: loop exit
PB: predicated region body
PF: predicated region fallthrough
CT: control target
= control target key end

     0   :  { %6 = vsyncpa [#allocation3], 0  ;;  %s305_s0 = inlined_call_operand.hbm [shape: f32[2,1024], index: 0, kind: input, shape index: {}]   ;;  %s306_s1 = inlined_call_operand.hbm [shape: f32[2,1024], index: 1, kind: output, shape index: {}]  }
   0x1   :  { %7 = vsyncpa [#allocation4], 0  ;;  %s251_s6 = smov [#allocation2]   ;;  %s203_s10 = scalar_lea.hbm %s305_s0, 256 }
   0x2   :  { %s14_s7 = sshll.u32 %s251_s6, 4  ;;  %p204_p0 = scmp.ne.s32.totalorder %s305_s0, %s203_s10  ;;  %s15_s7 = int_to_ptr.vmem [resolvable:$true] %s14_s7 }
   0x3   :  { %p207_p1 = scmp.lt.u32.totalorder %s203_s10, %s305_s0 }
   0x5   :  { %p209_p2 = pnand %p207_p1, %p204_p0 }
   0x7   :  { %212 = shalt.err (!%p209_p2)
}
   0x8   :  { %s213_s15 = scalar_lea.vmem %s15_s7, 256  ;;  %p218_p4 = scmp.lt.s32.totalorder %s15_s7, %s15_s7 }
   0x9   :  { %p214_p3 = scmp.ne.s32.totalorder %s15_s7, %s213_s15  ;;  %p219_p5 = scmp.lt.s32.totalorder %s213_s15, %s213_s15 }
   0xb   :  { %p220_p6 = por %p219_p5, %p218_p4 }
   0xd   :  { %p221_p7 = pnand %p220_p6, %p214_p3 }
   0xf   :  { %224 = shalt.err (!%p221_p7)
}
  0x10   :  { %17 = dma.hbm_to_vmem [thread:$0]  %s305_s0, 256, %s15_s7, [#allocation3]  }
  0x11   :  { %247 = dma.done.wait [#allocation3], 256  }
  0x12   :  { %248 = vsyncadd [#allocation3], 4294967040  ;;  %v29_v0 = vlaneseq  ;;  %v252_v1 = vmov 1983009808   ;;  %v21_v6 = vld [vmem:[#allocation2] sm:$0xff]  ;;  %v22_v7 = vld [vmem:[#allocation2 + $0x8] sm:$0xff] }
  0x13   :  { %v27_v2 = vunpack.c.l.s4 %v252_v1  ;;  %vm67_vm0 = vcmask 1041408   ;;  %v25_v8 = vcombine.high %v21_v6, %v21_v6  ;;  %v42_v10 = vcombine.high %v22_v7, %v22_v7  ;;  %s254_s0 = smov [#allocation5]  }
  0x14   :  { %v30_v3 = vshrl.u32 %v29_v0, 7  ;;  %v253_v33 = vmov 269488144   ;;  %s182_s18 = sshll.u32 %s254_s0, 4  ;;  %s183_s18 = int_to_ptr.vmem [resolvable:$true] %s182_s18 }
  0x15   :  { %v28_v4 = vunpack.c.0.s8 %v27_v2  ;;  %v87_v34 = vunpack.c.l.s4 %v253_v33  ;;  %s225_s19 = scalar_lea.vmem %s183_s18, 256  ;;  %p230_p9 = scmp.lt.s32.totalorder %s183_s18, %s183_s18 }
  0x16   :  { %p226_p8 = scmp.ne.s32.totalorder %s183_s18, %s225_s19  ;;  %p231_p10 = scmp.lt.s32.totalorder %s225_s19, %s225_s19 }
  0x17   :  { %v31_v5 = vsub.s32 %v28_v4, %v30_v3  ;;  %v88_v35 = vunpack.c.0.s8 %v87_v34 }
  0x18   :  { %p232_p11 = por %p231_p10, %p230_p9 }
  0x19   :  { %v32_v9 = vrot.slane %v21_v6, %v31_v5  ;;  %v49_v11 = vrot.slane %v22_v7, %v31_v5  ;;  %v39_v12 = vrot.slane %v25_v8, %v31_v5  ;;  %v56_v14 = vrot.slane %v42_v10, %v31_v5 }
  0x1a   :  { %v91_v36 = vsub.s32 %v88_v35, %v30_v3  ;;  %p233_p12 = pnand %p232_p11, %p226_p8 }
  0x1b   :  { %v40_v13 = vcombine.high %v32_v9, %v32_v9  ;;  %v57_v15 = vcombine.high %v49_v11, %v49_v11  ;;  %v68_v16 = vsel %vm67_vm0, %v32_v9, -inf  ;;  %v72_v17 = vsel %vm67_vm0, %v49_v11, -inf }
  0x1c   :  { %v41_v18 = vcombine.high %v39_v12, %v39_v12  ;;  %v58_v19 = vcombine.high %v56_v14, %v56_v14  ;;  %v70_v21 = vsel %vm67_vm0, %v39_v12, -inf  ;;  %v73_v22 = vmax.f32 %v68_v16, %v72_v17 }
  0x1d   :  { %v69_v20 = vsel %vm67_vm0, %v40_v13, -inf  ;;  %v74_v23 = vsel %vm67_vm0, %v57_v15, -inf  ;;  %v76_v24 = vsel %vm67_vm0, %v56_v14, -inf }
  0x1e   :  { %v71_v25 = vsel %vm67_vm0, %v41_v18, -inf  ;;  %v75_v26 = vmax.f32 %v69_v20, %v74_v23  ;;  %v77_v27 = vmax.f32 %v70_v21, %v76_v24  ;;  %v78_v28 = vsel %vm67_vm0, %v58_v19, -inf }
  0x1f   :  { %v79_v29 = vmax.f32 %v71_v25, %v78_v28 }
  0x20   :  { %v80_v30 = vmax.f32 %v73_v22, %v75_v26 }
  0x21   :  { %v81_v31 = vmax.f32 %v77_v27, %v79_v29 }
  0x23   :  { %v82_v32 = vmax.f32 %v80_v30, %v81_v31 }
  0x25   :  { %83 = vmax.xlane.f32.xlu0 %v82_v32 }
  0xb2   :  { %v84_v37 = vpop.xlane.xlu0 %83 }
  0xb3   :  { %v92_v38 = vrot.slane %v84_v37, %v91_v36 }
  0xb5   :  { %v94_v39 = vsub.f32 %v21_v6, %v92_v38  ;;  %v95_v40 = vsub.f32 %v22_v7, %v92_v38 }
  0xb7   :  { %v96_v41 = vmul.f32 1.442695, %v94_v39  ;;  %v98_v42 = vmul.f32 1.442695, %v95_v40 }
  0xb9   :  { %197 = vpow2.f32 %v96_v41 }
  0xba   :  { %199 = vpow2.f32 %v98_v42 }
  0xc3   :  { %v198_v43 = vpop.eup %197 }
  0xc4   :  { %v200_v44 = vpop.eup %199  ;;  %v102_v45 = vcombine.high %v198_v43, %v198_v43  ;;  %v109_v46 = vrot.slane %v198_v43, %v31_v5 }
  0xc5   :  { %v119_v49 = vcombine.high %v200_v44, %v200_v44  ;;  %v126_v51 = vrot.slane %v200_v44, %v31_v5 }
  0xc6   :  { %v116_v47 = vrot.slane %v102_v45, %v31_v5  ;;  %v117_v48 = vcombine.high %v109_v46, %v109_v46  ;;  %v144_v52 = vsel %vm67_vm0, %v109_v46, 0.0 }
  0xc7   :  { %v133_v57 = vrot.slane %v119_v49, %v31_v5  ;;  %v134_v58 = vcombine.high %v126_v51, %v126_v51  ;;  %v151_v61 = vsel %vm67_vm0, %v126_v51, 0.0 }
  0xc8   :  { %v118_v50 = vcombine.high %v116_v47, %v116_v47  ;;  %v145_v53 = vsel %vm67_vm0, %v117_v48, 0.0  ;;  %v147_v55 = vsel %vm67_vm0, %v116_v47, 0.0 }
  0xc9   :  { %v146_v54 = vadd.f32 %v145_v53, %v144_v52  ;;  %v135_v63 = vcombine.high %v133_v57, %v133_v57  ;;  %v153_v0 = vsel %vm67_vm0, %v134_v58, 0.0  ;;  %v155_v2 = vsel %vm67_vm0, %v133_v57, 0.0 }
  0xca   :  { %v149_v59 = vsel %vm67_vm0, %v118_v50, 0.0 }
  0xcb   :  { %v148_v56 = vadd.f32 %v147_v55, %v146_v54  ;;  %v157_v4 = vsel %vm67_vm0, %v135_v63, 0.0 }
  0xcd   :  { %v150_v60 = vadd.f32 %v149_v59, %v148_v56 }
  0xcf   :  { %v152_v62 = vadd.f32 %v151_v61, %v150_v60 }
  0xd1   :  { %v154_v1 = vadd.f32 %v153_v0, %v152_v62 }
  0xd3   :  { %v156_v3 = vadd.f32 %v155_v2, %v154_v1 }
  0xd5   :  { %v158_v6 = vadd.f32 %v157_v4, %v156_v3 }
  0xd7   :  { %159 = vadd.xlane.f32.xlu0 %v158_v6 }
 0x164   :  { %v160_v7 = vpop.xlane.xlu0 %159 }
 0x165   :  { %201 = vrcp.f32 %v160_v7 }
 0x16f   :  { %v202_v5 = vpop.eup %201 }
 0x170   :  { %v170_v8 = vrot.slane %v202_v5, %v91_v36 }
 0x172   :  { %v172_v9 = vmul.f32 %v198_v43, %v170_v8  ;;  %v173_v10 = vmul.f32 %v200_v44, %v170_v8 }
 0x174   :  { %174 = vst [vmem:[#allocation5] sm:$0xff] %v172_v9  ;;  %175 = vst [vmem:[#allocation5 + $0x8] sm:$0xff] %v173_v10 }
 0x175   :  { %236 = shalt.err (!%p233_p12)
}
 0x176   :  { %s237_s22 = scalar_lea.hbm %s306_s1, 256 }
 0x177   :  { %p238_p13 = scmp.ne.s32.totalorder %s306_s1, %s237_s22  ;;  %p241_p0 = scmp.lt.u32.totalorder %s237_s22, %s306_s1 }
 0x179   :  { %p243_p1 = pnand %p241_p0, %p238_p13 }
 0x17b   :  { %246 = shalt.err (!%p243_p1)
}
 0x17c   :  { %185 = dma.vmem_to_hbm [thread:$0]  %s183_s18, 256, %s306_s1, [#allocation4]  }
 0x17d   :  { %249 = dma.done.wait [#allocation4], 256  }
 0x17e   :  { %250 = vsyncadd [#allocation4], 4294967040 }
 0x17f   :  { %189 = vsyncpa [#allocation3], 1 }
 0x180   :  { %190 = vsyncpa [#allocation4], 1 }

</bundles_post_ra>
